<compile_context>
chip_gen: v7x
topology: tpu7x:2x2x1
jax: 0.10.0
libtpu: 0.0.40
codegen_flags: <defaults>
</compile_context>

<pallas_src>
import jax
import jax.numpy as jnp
from jax.experimental import pallas as pl
from jax.experimental.pallas import tpu as pltpu

# ---- vocab construction, identical in content to the PyTorch script ----------
negative_responses = ['no', 'nope', 'nop', 'nel', 'nunca', 'jamás', 'nah',
                      'imposible', 'para nada', 'ni de chiste', 'negativo']
positive_responses = ['sí', 'sip', 'sipo', 'ajá', 'claro', 'por supuesto',
                      'seguro', 'sí, claro', 'obvio', 'yep', 'yeah', 'yup',
                      'definitivamente', 'afirmativo', 'correcto', 'eso es']
responses = positive_responses + negative_responses
vocab = {word: i for i, word in enumerate(sorted(set(' '.join(responses).split())))}

VOCAB_SIZE = len(vocab)
EMBEDDING_DIM = 10
HIDDEN_DIM = 5


# ---- Pallas kernel -----------------------------------------------------------
def classifier_kernel(ids_t_ref, w_eff_t_ref, b1_ref, w2_ref, b2_ref, out_ref):
    # ids_t_ref  : (S, B) int32   token ids, batch on the lane axis
    # w_eff_t_ref: (H, V) f32     (1/S) * w1 @ emb_table^T   (lookup+mean+fc fold)
    # b1_ref     : (H, 1) f32     fc bias, column
    # w2_ref     : (H, 1) f32     output weight, column
    # b2_ref     : (1, 1) f32     output bias
    # out_ref    : (1, B) f32     lane-dense probabilities
    ids_t = ids_t_ref[...]                               # (S, B)
    S, B = ids_t.shape
    H, V = w_eff_t_ref.shape

    # 2-D bag-of-words accumulation (no (B, S, V) one-hot).  S is tiny, so a
    # static unrolled loop keeps everything in vregs; each step is a sublane
    # broadcast + compare + add on the VPU.
    vocab_iota = jax.lax.broadcasted_iota(jnp.int32, (V, B), 0)
    bow_t = (ids_t[0:1, :] == vocab_iota).astype(jnp.float32)          # (V, B)
    for s in range(1, S):
        bow_t = bow_t + (ids_t[s:s + 1, :] == vocab_iota).astype(jnp.float32)
    # NOTE: the 1/S mean scale is pre-folded into w_eff_t in the wrapper.

    # Fused embedding-lookup + mean + fc: single MXU matmul (H, V) @ (V, B).
    hidden_t = jnp.dot(w_eff_t_ref[...], bow_t,
                       preferred_element_type=jnp.float32) + b1_ref[...]  # (H, B)
    hidden_t = jnp.maximum(hidden_t, 0.0)                                 # ReLU

    # Output layer: VPU multiply + cross-sublane (XLU) reduce — no second MXU
    # matmul for a 5-element dot.  Result is lane-dense (1, B).
    logits = jnp.sum(hidden_t * w2_ref[...], axis=0, keepdims=True) + b2_ref[...]
    out_ref[...] = jax.nn.sigmoid(logits)                                 # (1, B)


# ---- wrapper: weight prep hoisted out of the hot forward path ----------------
def make_simple_classifier(emb_table, w1, b1, w2, b2, seq_len):
    """Builds a forward fn.  All static per-weight-set prep happens here, once."""
    V, E = emb_table.shape
    H = w1.shape[0]

    # W_eff^T = (1/S) * w1 @ emb_table^T : folds lookup + mean + fc (exact
    # linear fold; 1/S folded so the kernel does no per-call scale multiply).
    w_eff_t = (jnp.dot(w1, emb_table.T, preferred_element_type=jnp.float32)
               * (1.0 / seq_len)).astype(jnp.float32)          # (H, V)
    b1_col = b1.reshape(H, 1).astype(jnp.float32)              # (H, 1)
    w2_col = w2.reshape(H, 1).astype(jnp.float32)              # (H, 1)
    b2_2d = b2.reshape(1, 1).astype(jnp.float32)               # (1, 1)

    vmem = pltpu.MemorySpace.VMEM

    @jax.jit
    def forward(x_ids):
        """x_ids: (B, S) int32 token indices -> (B, 1) f32 probabilities."""
        B, S = x_ids.shape
        assert S == seq_len
        ids_t = x_ids.astype(jnp.int32).T                       # (S, B): batch on lanes
        out_1b = pl.pallas_call(
            classifier_kernel,
            out_shape=jax.ShapeDtypeStruct((1, B), jnp.float32),
            in_specs=[
                pl.BlockSpec(memory_space=vmem),   # ids_t     (S, B) int32
                pl.BlockSpec(memory_space=vmem),   # w_eff_t   (H, V)
                pl.BlockSpec(memory_space=vmem),   # b1 column (H, 1)
                pl.BlockSpec(memory_space=vmem),   # w2 column (H, 1)
                pl.BlockSpec(memory_space=vmem),   # b2        (1, 1)
            ],
            out_specs=pl.BlockSpec(memory_space=vmem),
        )(ids_t, w_eff_t, b1_col, w2_col, b2_2d)
        return out_1b.T                                          # (B, 1)

    return forward


# ---- pure-JAX reference for a correctness check ------------------------------
def reference_forward(x_ids, emb_table, w1, b1, w2, b2):
    embedded = emb_table[x_ids].mean(axis=1)                 # (B, E)
    hidden = jax.nn.relu(embedded @ w1.T + b1)               # (B, H)
    return jax.nn.sigmoid(hidden @ w2.T + b2)                # (B, 1)


if __name__ == "__main__":
    B, S = 2, 8

    key = jax.random.PRNGKey(0)
    k_x, k_emb, k_w1, k_b1, k_w2, k_b2 = jax.random.split(key, 6)

    x = jax.random.randint(k_x, (B, S), 0, VOCAB_SIZE, dtype=jnp.int32)

    # deterministic parameter init (shapes follow the nn.Module __init__)
    emb_table = jax.random.normal(k_emb, (VOCAB_SIZE, EMBEDDING_DIM), jnp.float32)
    lim1 = 1.0 / (EMBEDDING_DIM ** 0.5)
    w1 = jax.random.uniform(k_w1, (HIDDEN_DIM, EMBEDDING_DIM), jnp.float32, -lim1, lim1)
    b1 = jax.random.uniform(k_b1, (HIDDEN_DIM,), jnp.float32, -lim1, lim1)
    lim2 = 1.0 / (HIDDEN_DIM ** 0.5)
    w2 = jax.random.uniform(k_w2, (1, HIDDEN_DIM), jnp.float32, -lim2, lim2)
    b2 = jax.random.uniform(k_b2, (1,), jnp.float32, -lim2, lim2)

    forward = make_simple_classifier(emb_table, w1, b1, w2, b2, seq_len=S)
    out = jax.block_until_ready(forward(x))

    ref = reference_forward(x, emb_table, w1, b1, w2, b2)
    assert out.shape == (B, 1)
    assert jnp.allclose(out, ref, atol=1e-5, rtol=1e-5), (out, ref)

    print("KERNEL_OK")
</pallas_src>

<mosaic_0001>
module attributes {stable_mosaic.version = 11 : i64} {
  func.func @classifier_kernel(%arg0: memref<8x2xi32, #tpu.memory_space<vmem>>, %arg1: memref<5x32xf32, #tpu.memory_space<vmem>>, %arg2: memref<5x1xf32, #tpu.memory_space<vmem>>, %arg3: memref<5x1xf32, #tpu.memory_space<vmem>>, %arg4: memref<1x1xf32, #tpu.memory_space<vmem>>, %arg5: memref<1x2xf32, #tpu.memory_space<vmem>>) attributes {dimension_semantics = [], scalar_prefetch = 0 : i64, scratch_operands = 0 : i64, tpu.core_type = #tpu.core_type<tc>} {
    %c0 = arith.constant 0 : index
    %c0_0 = arith.constant 0 : index
    %0 = vector.load %arg0[%c0, %c0_0] : memref<8x2xi32, #tpu.memory_space<vmem>>, vector<8x2xi32>
    %1 = tpu.iota {dimensions = array<i32: 0>} : vector<32x2xi32>
    %2 = vector.extract_strided_slice %0 {offsets = [0, 0], sizes = [1, 2], strides = [1, 1]} : vector<8x2xi32> to vector<1x2xi32>
    %3 = vector.broadcast %2 : vector<1x2xi32> to vector<32x2xi32>
    %4 = arith.cmpi eq, %3, %1 : vector<32x2xi32>
    %5 = arith.extui %4 : vector<32x2xi1> to vector<32x2xi32>
    %6 = arith.sitofp %5 : vector<32x2xi32> to vector<32x2xf32>
    %7 = vector.extract_strided_slice %0 {offsets = [1, 0], sizes = [1, 2], strides = [1, 1]} : vector<8x2xi32> to vector<1x2xi32>
    %8 = vector.broadcast %7 : vector<1x2xi32> to vector<32x2xi32>
    %9 = arith.cmpi eq, %8, %1 : vector<32x2xi32>
    %10 = arith.extui %9 : vector<32x2xi1> to vector<32x2xi32>
    %11 = arith.sitofp %10 : vector<32x2xi32> to vector<32x2xf32>
    %12 = arith.addf %6, %11 : vector<32x2xf32>
    %13 = vector.extract_strided_slice %0 {offsets = [2, 0], sizes = [1, 2], strides = [1, 1]} : vector<8x2xi32> to vector<1x2xi32>
    %14 = vector.broadcast %13 : vector<1x2xi32> to vector<32x2xi32>
    %15 = arith.cmpi eq, %14, %1 : vector<32x2xi32>
    %16 = arith.extui %15 : vector<32x2xi1> to vector<32x2xi32>
    %17 = arith.sitofp %16 : vector<32x2xi32> to vector<32x2xf32>
    %18 = arith.addf %12, %17 : vector<32x2xf32>
    %19 = vector.extract_strided_slice %0 {offsets = [3, 0], sizes = [1, 2], strides = [1, 1]} : vector<8x2xi32> to vector<1x2xi32>
    %20 = vector.broadcast %19 : vector<1x2xi32> to vector<32x2xi32>
    %21 = arith.cmpi eq, %20, %1 : vector<32x2xi32>
    %22 = arith.extui %21 : vector<32x2xi1> to vector<32x2xi32>
    %23 = arith.sitofp %22 : vector<32x2xi32> to vector<32x2xf32>
    %24 = arith.addf %18, %23 : vector<32x2xf32>
    %25 = vector.extract_strided_slice %0 {offsets = [4, 0], sizes = [1, 2], strides = [1, 1]} : vector<8x2xi32> to vector<1x2xi32>
    %26 = vector.broadcast %25 : vector<1x2xi32> to vector<32x2xi32>
    %27 = arith.cmpi eq, %26, %1 : vector<32x2xi32>
    %28 = arith.extui %27 : vector<32x2xi1> to vector<32x2xi32>
    %29 = arith.sitofp %28 : vector<32x2xi32> to vector<32x2xf32>
    %30 = arith.addf %24, %29 : vector<32x2xf32>
    %31 = vector.extract_strided_slice %0 {offsets = [5, 0], sizes = [1, 2], strides = [1, 1]} : vector<8x2xi32> to vector<1x2xi32>
    %32 = vector.broadcast %31 : vector<1x2xi32> to vector<32x2xi32>
    %33 = arith.cmpi eq, %32, %1 : vector<32x2xi32>
    %34 = arith.extui %33 : vector<32x2xi1> to vector<32x2xi32>
    %35 = arith.sitofp %34 : vector<32x2xi32> to vector<32x2xf32>
    %36 = arith.addf %30, %35 : vector<32x2xf32>
    %37 = vector.extract_strided_slice %0 {offsets = [6, 0], sizes = [1, 2], strides = [1, 1]} : vector<8x2xi32> to vector<1x2xi32>
    %38 = vector.broadcast %37 : vector<1x2xi32> to vector<32x2xi32>
    %39 = arith.cmpi eq, %38, %1 : vector<32x2xi32>
    %40 = arith.extui %39 : vector<32x2xi1> to vector<32x2xi32>
    %41 = arith.sitofp %40 : vector<32x2xi32> to vector<32x2xf32>
    %42 = arith.addf %36, %41 : vector<32x2xf32>
    %43 = vector.extract_strided_slice %0 {offsets = [7, 0], sizes = [1, 2], strides = [1, 1]} : vector<8x2xi32> to vector<1x2xi32>
    %44 = vector.broadcast %43 : vector<1x2xi32> to vector<32x2xi32>
    %45 = arith.cmpi eq, %44, %1 : vector<32x2xi32>
    %46 = arith.extui %45 : vector<32x2xi1> to vector<32x2xi32>
    %47 = arith.sitofp %46 : vector<32x2xi32> to vector<32x2xf32>
    %48 = arith.addf %42, %47 : vector<32x2xf32>
    %c0_1 = arith.constant 0 : index
    %c0_2 = arith.constant 0 : index
    %49 = vector.load %arg1[%c0_1, %c0_2] : memref<5x32xf32, #tpu.memory_space<vmem>>, vector<5x32xf32>
    %cst = arith.constant dense<0.000000e+00> : vector<5x2xf32>
    %50 = tpu.matmul %49, %48, %cst {dimension_numbers = #tpu.dot_dimension_numbers<[1], [0], [0], [1], [0, 0, 1, 1], [], []>} : vector<5x32xf32>, vector<32x2xf32>, vector<5x2xf32> -> vector<5x2xf32>
    %c0_3 = arith.constant 0 : index
    %c0_4 = arith.constant 0 : index
    %51 = vector.load %arg2[%c0_3, %c0_4] : memref<5x1xf32, #tpu.memory_space<vmem>>, vector<5x1xf32>
    %52 = vector.broadcast %51 : vector<5x1xf32> to vector<5x2xf32>
    %53 = arith.addf %50, %52 : vector<5x2xf32>
    %cst_5 = arith.constant 0.000000e+00 : f32
    %54 = vector.broadcast %cst_5 : f32 to vector<5x2xf32>
    %55 = arith.maximumf %53, %54 : vector<5x2xf32>
    %c0_6 = arith.constant 0 : index
    %c0_7 = arith.constant 0 : index
    %56 = vector.load %arg3[%c0_6, %c0_7] : memref<5x1xf32, #tpu.memory_space<vmem>>, vector<5x1xf32>
    %57 = vector.broadcast %56 : vector<5x1xf32> to vector<5x2xf32>
    %58 = arith.mulf %55, %57 : vector<5x2xf32>
    %cst_8 = arith.constant dense<0.000000e+00> : vector<2xf32>
    %59 = vector.multi_reduction <add>, %58, %cst_8 [0] : vector<5x2xf32> to vector<2xf32>
    %60 = vector.shape_cast %59 : vector<2xf32> to vector<1x2xf32>
    %c0_9 = arith.constant 0 : index
    %c0_10 = arith.constant 0 : index
    %61 = vector.load %arg4[%c0_9, %c0_10] : memref<1x1xf32, #tpu.memory_space<vmem>>, vector<1x1xf32>
    %62 = vector.broadcast %61 : vector<1x1xf32> to vector<1x2xf32>
    %63 = arith.addf %60, %62 : vector<1x2xf32>
    %64 = arith.negf %63 : vector<1x2xf32>
    %65 = math.exp %64 : vector<1x2xf32>
    %cst_11 = arith.constant 1.000000e+00 : f32
    %66 = vector.broadcast %cst_11 : f32 to vector<1x2xf32>
    %67 = arith.addf %66, %65 : vector<1x2xf32>
    %68 = arith.divf %66, %67 : vector<1x2xf32>
    %c0_12 = arith.constant 0 : index
    %c0_13 = arith.constant 0 : index
    %69 = vector.load %arg5[%c0_12, %c0_13] : memref<1x2xf32, #tpu.memory_space<vmem>>, vector<1x2xf32>
    tpu.vector_store %arg5[%c0_12, %c0_13], %68 {strides = array<i32>} : memref<1x2xf32, #tpu.memory_space<vmem>>, vector<1x2xf32>,
    return
  }
}

</mosaic_0001>

<bundles_post_ra>
// kernel: forward.1
= control target key start
LH: loop header
LB: loop body
LE: loop exit
PB: predicated region body
PF: predicated region fallthrough
CT: control target
= control target key end

     0   :  { %s648_s0 = inlined_call_operand.vmem [shape: s32[8,2], index: 0, kind: input, shape index: {}]   ;;  %s649_s1 = inlined_call_operand.hbm [shape: f32[5,32], index: 1, kind: input, shape index: {}]   ;;  %s650_s2 = inlined_call_operand.vmem [shape: f32[5,1], index: 2, kind: input, shape index: {}]   ;;  %s651_s3 = inlined_call_operand.vmem [shape: f32[5,1], index: 3, kind: input, shape index: {}]   ;;  %s652_s4 = inlined_call_operand.<no memory space> [shape: f32[1,1], index: 4, kind: input, shape index: {}]   ;;  %s653_s5 = inlined_call_operand.hbm [shape: f32[1,2], index: 5, kind: output, shape index: {}]  }
   0x1   :  { %v10_v0 = vstv %s652_s4 }
   0x2   :  { %11 = vst [vmem:[#allocation2] sm:$0x1] %v10_v0 }
   0x3   :  { %12 = vsyncpa [#allocation4], 0 }
   0x4   :  { %13 = vsyncpa [#allocation5], 0  ;;  %s444_s20 = smov [#allocation3]   ;;  %s396_s24 = scalar_lea.hbm %s649_s1, 128 }
   0x5   :  { %s22_s21 = sshll.u32 %s444_s20, 4  ;;  %p397_p0 = scmp.ne.s32.totalorder %s649_s1, %s396_s24  ;;  %s23_s21 = int_to_ptr.vmem [resolvable:$true] %s22_s21 }
   0x6   :  { %p400_p1 = scmp.lt.u32.totalorder %s396_s24, %s649_s1 }
   0x8   :  { %p402_p2 = pnand %p400_p1, %p397_p0 }
   0xa   :  { %405 = shalt.err (!%p402_p2)
}
   0xb   :  { %s406_s4 = scalar_lea.vmem %s23_s21, 128  ;;  %p411_p4 = scmp.lt.s32.totalorder %s23_s21, %s23_s21 }
   0xc   :  { %p407_p3 = scmp.ne.s32.totalorder %s23_s21, %s406_s4  ;;  %p412_p5 = scmp.lt.s32.totalorder %s406_s4, %s406_s4 }
   0xe   :  { %p413_p6 = por %p412_p5, %p411_p4 }
  0x10   :  { %p414_p7 = pnand %p413_p6, %p407_p3 }
  0x12   :  { %417 = shalt.err (!%p414_p7)
}
  0x13   :  { %25 = dma.hbm_to_vmem [thread:$0]  %s649_s1, 128, %s23_s21, [#allocation4]  }
  0x14   :  { %440 = dma.done.wait [#allocation4], 128  }
  0x15   :  { %441 = vsyncadd [#allocation4], 4294967168  ;;  %v36_v1 = vlaneseq  ;;  %v445_v2 = vmov 0.0|0.0   ;;  %vm446_vm0 = vmmov 0   ;;  %v447_v3 = vmov 0.0   ;;  %v35_v15 = vld [vmem:[%s648_s0] sm:$0xff] }
  0x16   :  { %378 = vmatprep.subr.bf16.mxu0 %v445_v2  ;;  %375 = vmatprep.mubr.msk.f32.mxu0 %vm446_vm0, %v447_v3  ;;  %v448_v5 = vmov 0   ;;  %v198_v18 = vld [vmem:[%s650_s2] sm:$0x1f]  ;;  %v294_v23 = vld [vmem:[#allocation2] sm:$0x1] }
  0x17   :  { %v497_v4 = vshrl.u32 %v36_v1, 7  ;;  %390 = vset.pattern.permute.xlu0 %v448_v5  ;;  %391 = vset.pattern.permute.xlu1 %v448_v5  ;;  %v279_v28 = vld [vmem:[%s651_s3] sm:$0x1f]  ;;  %s449_s3 = smov [#allocation6]  }
  0x18   :  { %201 = vperm.xlu0 %390, %v198_v18   ;;  %297 = vperm.xlu1 %391, %v294_v23   ;;  %s319_s9 = sshll.u32 %s449_s3, 4  ;;  %s320_s9 = int_to_ptr.vmem [resolvable:$true] %s319_s9 }
  0x19   :  { %v43_v6 = vsub.s32 0, %v497_v4  ;;  %v59_v7 = vsub.s32 1, %v497_v4  ;;  %v79_v8 = vsub.s32 2, %v497_v4  ;;  %v99_v9 = vsub.s32 3, %v497_v4  ;;  %s418_s10 = scalar_lea.vmem %s320_s9, 16  ;;  %s422_s11 = scalar_lea.vmem %s320_s9, 32 }
  0x1a   :  { %v119_v10 = vsub.s32 4, %v497_v4  ;;  %v139_v11 = vsub.s32 5, %v497_v4  ;;  %v159_v12 = vsub.s32 6, %v497_v4  ;;  %v507_v13 = vadd.s32 8, %v497_v4  ;;  %p419_p8 = scmp.ne.s32.totalorder %s320_s9, %s418_s10  ;;  %p423_p9 = scmp.lt.s32.totalorder %s320_s9, %s320_s9 }
  0x1b   :  { %v179_v14 = vsub.s32 7, %v497_v4  ;;  %v514_v16 = vadd.s32 16, %v497_v4  ;;  %v517_v17 = vadd.s32 24, %v497_v4  ;;  %v44_v19 = vrot.slane %v35_v15, %v43_v6  ;;  %p424_p10 = scmp.lt.s32.totalorder %s422_s11, %s418_s10 }
  0x1c   :  { %v524_v20 = vrot.slane %v35_v15, %v59_v7  ;;  %v526_v21 = vrot.slane %v35_v15, %v79_v8  ;;  %v528_v22 = vrot.slane %v35_v15, %v99_v9  ;;  %v530_v24 = vrot.slane %v35_v15, %v119_v10  ;;  %282 = vperm.xlu0 %390, %v279_v28  }
  0x1d   :  { %v532_v25 = vrot.slane %v35_v15, %v139_v11  ;;  %v534_v26 = vrot.slane %v35_v15, %v159_v12  ;;  %v536_v27 = vrot.slane %v35_v15, %v179_v14  ;;  %vm45_vm1 = vcmp.eq.s32.totalorder %v44_v19, %v497_v4  ;;  %p425_p11 = por %p424_p10, %p423_p9 }
  0x1e   :  { %vm46_vm2 = vcmp.eq.s32.totalorder %v44_v19, %v507_v13  ;;  %vm61_vm3 = vcmp.eq.s32.totalorder %v524_v20, %v497_v4  ;;  %vm62_vm4 = vcmp.eq.s32.totalorder %v524_v20, %v507_v13  ;;  %v328_v29 = vsel %vm45_vm1, 1.0, %v447_v3 }
  0x1f   :  { %v329_v30 = vsel %vm46_vm2, 1.0, %v447_v3  ;;  %v332_v31 = vsel %vm61_vm3, 1.0, %v447_v3  ;;  %v333_v32 = vsel %vm62_vm4, 1.0, %v447_v3  ;;  %vm81_vm5 = vcmp.eq.s32.totalorder %v526_v21, %v497_v4  ;;  %p426_p12 = pnand %p425_p11, %p419_p8 }
  0x20   :  { %v73_v33 = vadd.f32 %v332_v31, %v328_v29  ;;  %v74_v34 = vadd.f32 %v333_v32, %v329_v30  ;;  %vm82_vm6 = vcmp.eq.s32.totalorder %v526_v21, %v507_v13  ;;  %v336_v35 = vsel %vm81_vm5, 1.0, %v447_v3 }
  0x21   :  { %v337_v36 = vsel %vm82_vm6, 1.0, %v447_v3  ;;  %vm101_vm7 = vcmp.eq.s32.totalorder %v528_v22, %v497_v4  ;;  %vm102_vm8 = vcmp.eq.s32.totalorder %v528_v22, %v507_v13  ;;  %vm121_vm9 = vcmp.eq.s32.totalorder %v530_v24, %v497_v4 }
  0x22   :  { %v93_v37 = vadd.f32 %v336_v35, %v73_v33  ;;  %v94_v38 = vadd.f32 %v337_v36, %v74_v34  ;;  %v340_v39 = vsel %vm101_vm7, 1.0, %v447_v3  ;;  %v341_v40 = vsel %vm102_vm8, 1.0, %v447_v3  ;;  %v197_v33 = vld [vmem:[#allocation3] sm:$0x1f] }
  0x23   :  { %vm122_vm10 = vcmp.eq.s32.totalorder %v530_v24, %v507_v13  ;;  %vm141_vm11 = vcmp.eq.s32.totalorder %v532_v25, %v497_v4  ;;  %vm142_vm12 = vcmp.eq.s32.totalorder %v532_v25, %v507_v13  ;;  %v344_v43 = vsel %vm121_vm9, 1.0, %v447_v3 }
  0x24   :  { %v113_v41 = vadd.f32 %v340_v39, %v93_v37  ;;  %v114_v42 = vadd.f32 %v341_v40, %v94_v38  ;;  %v345_v44 = vsel %vm122_vm10, 1.0, %v447_v3  ;;  %v348_v45 = vsel %vm141_vm11, 1.0, %v447_v3 }
  0x25   :  { %v349_v46 = vsel %vm142_vm12, 1.0, %v447_v3  ;;  %vm161_vm13 = vcmp.eq.s32.totalorder %v534_v26, %v497_v4  ;;  %vm162_vm14 = vcmp.eq.s32.totalorder %v534_v26, %v507_v13  ;;  %vm181_vm15 = vcmp.eq.s32.totalorder %v536_v27, %v497_v4 }
  0x26   :  { %v133_v47 = vadd.f32 %v344_v43, %v113_v41  ;;  %v134_v48 = vadd.f32 %v345_v44, %v114_v42  ;;  %v352_v49 = vsel %vm161_vm13, 1.0, %v447_v3  ;;  %v353_v50 = vsel %vm162_vm14, 1.0, %v447_v3 }
  0x27   :  { %vm182_vm0 = vcmp.eq.s32.totalorder %v536_v27, %v507_v13  ;;  %vm47_vm1 = vcmp.eq.s32.totalorder %v44_v19, %v514_v16  ;;  %vm48_vm2 = vcmp.eq.s32.totalorder %v44_v19, %v517_v17  ;;  %v356_v53 = vsel %vm181_vm15, 1.0, %v447_v3 }
  0x28   :  { %v153_v51 = vadd.f32 %v348_v45, %v133_v47  ;;  %v154_v52 = vadd.f32 %v349_v46, %v134_v48  ;;  %v357_v54 = vsel %vm182_vm0, 1.0, %v447_v3  ;;  %v330_v55 = vsel %vm47_vm1, 1.0, %v447_v3 }
  0x29   :  { %v331_v56 = vsel %vm48_vm2, 1.0, %v447_v3  ;;  %vm63_vm3 = vcmp.eq.s32.totalorder %v524_v20, %v514_v16  ;;  %vm64_vm4 = vcmp.eq.s32.totalorder %v524_v20, %v517_v17  ;;  %vm83_vm5 = vcmp.eq.s32.totalorder %v526_v21, %v514_v16 }
  0x2a   :  { %v173_v57 = vadd.f32 %v352_v49, %v153_v51  ;;  %v174_v58 = vadd.f32 %v353_v50, %v154_v52  ;;  %v334_v59 = vsel %vm63_vm3, 1.0, %v447_v3  ;;  %v335_v60 = vsel %vm64_vm4, 1.0, %v447_v3 }
  0x2b   :  { %v75_v61 = vadd.f32 %v334_v59, %v330_v55  ;;  %v76_v62 = vadd.f32 %v335_v60, %v331_v56  ;;  %vm84_vm6 = vcmp.eq.s32.totalorder %v526_v21, %v517_v17  ;;  %v338_v1 = vsel %vm83_vm5, 1.0, %v447_v3 }
  0x2c   :  { %v193_v63 = vadd.f32 %v356_v53, %v173_v57  ;;  %v194_v0 = vadd.f32 %v357_v54, %v174_v58  ;;  %v339_v5 = vsel %vm84_vm6, 1.0, %v447_v3  ;;  %vm103_vm7 = vcmp.eq.s32.totalorder %v528_v22, %v514_v16 }
  0x2d   :  { %v95_v7 = vadd.f32 %v338_v1, %v75_v61  ;;  %v96_v8 = vadd.f32 %v339_v5, %v76_v62  ;;  %vm104_vm8 = vcmp.eq.s32.totalorder %v528_v22, %v517_v17  ;;  %v342_v10 = vsel %vm103_vm7, 1.0, %v447_v3 }
  0x2e   :  { %v379_v9 = vpack.c.bf16 %v194_v0, %v193_v63  ;;  %v343_v11 = vsel %vm104_vm8, 1.0, %v447_v3  ;;  %vm123_vm9 = vcmp.eq.s32.totalorder %v530_v24, %v514_v16  ;;  %vm124_vm10 = vcmp.eq.s32.totalorder %v530_v24, %v517_v17 }
  0x2f   :  { %v115_v12 = vadd.f32 %v342_v10, %v95_v7  ;;  %v116_v13 = vadd.f32 %v343_v11, %v96_v8  ;;  %v346_v14 = vsel %vm123_vm9, 1.0, %v447_v3  ;;  %v347_v15 = vsel %vm124_vm10, 1.0, %v447_v3 }
  0x30   :  { %380 = vmatpush3.bf16.msra.mxu0 %v379_v9  ;;  %vm143_vm11 = vcmp.eq.s32.totalorder %v532_v25, %v514_v16  ;;  %vm144_vm12 = vcmp.eq.s32.totalorder %v532_v25, %v517_v17  ;;  %vm163_vm13 = vcmp.eq.s32.totalorder %v534_v26, %v514_v16  ;;  %vm164_vm14 = vcmp.eq.s32.totalorder %v534_v26, %v517_v17 }
  0x31   :  { %381 = vmatprep.subr.bf16.mxu0 %v445_v2  ;;  %v135_v18 = vadd.f32 %v346_v14, %v115_v12  ;;  %v136_v19 = vadd.f32 %v347_v15, %v116_v13  ;;  %v350_v20 = vsel %vm143_vm11, 1.0, %v447_v3  ;;  %v351_v21 = vsel %vm144_vm12, 1.0, %v447_v3 }
  0x32   :  { %v354_v22 = vsel %vm163_vm13, 1.0, %v447_v3  ;;  %vm183_vm15 = vcmp.eq.s32.totalorder %v536_v27, %v514_v16  ;;  %vm184_vm0 = vcmp.eq.s32.totalorder %v536_v27, %v517_v17  ;;  %v355_v2 = vsel %vm164_vm14, 1.0, %v447_v3 }
  0x33   :  { %v155_v23 = vadd.f32 %v350_v20, %v135_v18  ;;  %v156_v24 = vadd.f32 %v351_v21, %v136_v19  ;;  %v358_v25 = vsel %vm183_vm15, 1.0, %v447_v3  ;;  %v359_v28 = vsel %vm184_vm0, 1.0, %v447_v3 }
  0x34   :  { %vm204_vm1 = vcmask 261120   ;;  %vm286_vm2 = vcmask 12288   ;;  %vm311_vm3 = vcmask 8192  }
  0x35   :  { %v175_v29 = vadd.f32 %v354_v22, %v155_v23  ;;  %v176_v30 = vadd.f32 %v355_v2, %v156_v24 }
  0x37   :  { %v195_v31 = vadd.f32 %v358_v25, %v175_v29  ;;  %v196_v26 = vadd.f32 %v359_v28, %v176_v30 }
  0x39   :  { %v382_v32 = vpack.c.bf16 %v196_v26, %v195_v31 }
  0x3b   :  { %383 = vmatpush3.bf16.msra.mxu0 %v382_v32 }
  0x3e   :  { %376 = vmatmul.mubr.msk.f32.vlgmr.msra.gmra.mrb[0].mxu0 %vm204_vm1, %v197_v33 }
  0x97   :  { %v202_v16 = vpop.permute.xlu0 %201  ;;  %v298_v41 = vpop.permute.xlu1 %297 }
  0x98   :  { %v303_v44 = vrot.slane %v298_v41, %v43_v6 }
  0x9b   :  { %v283_v36 = vpop.permute.xlu0 %282 }
 0x111   :  { %v274_v34 = vpop.f32.mrb[0].mxu0 }
 0x112   :  { %v275_v17 = vadd.f32 %v274_v34, %v202_v16  ;;  %v377_v27 = vpop.f32.mrb[1].mxu0 }
 0x114   :  { %v278_v35 = vmax.f32 %v275_v17, 0.0 }
 0x116   :  { %v285_v37 = vmul.f32 %v283_v36, %v278_v35 }
 0x118   :  { %v287_v38 = vsel %vm286_vm2, %v285_v37, 0.0 }
 0x119   :  { %v288_v39 = vrot.slane %v287_v38, 4 }
 0x11b   :  { %v289_v3 = vadd.f32 %v288_v39, %v287_v38 }
 0x11d   :  { %v290_v40 = vrot.slane %v289_v3, 2 }
 0x11f   :  { %v291_v42 = vadd.f32 %v290_v40, %v289_v3 }
 0x121   :  { %v292_v43 = vrot.slane %v291_v42, 1 }
 0x123   :  { %v293_v45 = vadd.f32 %v292_v43, %v291_v42 }
 0x125   :  { %v304_v46 = vadd.f32 %v303_v44, %v293_v45 }
 0x127   :  { %v361_v47 = vmul.f32 -1.442695, %v304_v46 }
 0x129   :  { %392 = vpow2.f32 %v361_v47 }
 0x133   :  { %v393_v48 = vpop.eup %392 }
 0x134   :  { %v308_v49 = vadd.f32 1.0, %v393_v48 }
 0x136   :  { %394 = vrcp.f32 %v308_v49 }
 0x140   :  { %v395_v50 = vpop.eup %394 }
 0x141   :  { %312 = vst.msk [vmem:[#allocation6] sm:$0x1] %vm311_vm3, %v395_v50 }
 0x142   :  { %429 = shalt.err (!%p426_p12)
}
 0x143   :  { %s430_s14 = scalar_lea.hbm %s653_s5, 16 }
 0x144   :  { %p431_p13 = scmp.ne.s32.totalorder %s653_s5, %s430_s14  ;;  %p434_p0 = scmp.lt.u32.totalorder %s430_s14, %s653_s5 }
 0x146   :  { %p436_p1 = pnand %p434_p0, %p431_p13 }
 0x148   :  { %439 = shalt.err (!%p436_p1)
}
 0x149   :  { %322 = dma.vmem_to_hbm [thread:$0]  %s320_s9, 16, %s653_s5, [#allocation5]  }
 0x14a   :  { %442 = dma.done.wait [#allocation5], 16  }
 0x14b   :  { %443 = vsyncadd [#allocation5], 4294967280 }
 0x14c   :  { %326 = vsyncpa [#allocation4], 1 }
 0x14d   :  { %327 = vsyncpa [#allocation5], 1 }

</bundles_post_ra>
